<compile_context>
chip_gen: v6e
topology: v6e:2x2x1
jax: 0.10.0
libtpu: 0.0.40
codegen_flags: <defaults>
</compile_context>

<pallas_src>
import jax
import jax.numpy as jnp
from jax.experimental import pallas as pl
from jax.experimental.pallas import tpu as pltpu


def _round_up(x: int, m: int) -> int:
    return ((x + m - 1) // m) * m


def _basemodel_kernel(x_ref, w1t_ref, b1t_ref, wdr_ref, bd_ref, out_ref):
    # Transpose the batch tile once (XLU slot, idle otherwise) so every later
    # op runs on a lane-dense layout.
    x_t = x_ref[...].T                                                # (D, TN)

    # h_T = relu(W1^T @ x^T + b1^T)                                    (H, TN)
    h_t = jnp.dot(w1t_ref[...], x_t, preferred_element_type=jnp.float32)
    h_t = jnp.maximum(h_t + b1t_ref[...], 0.0)

    # Binary softmax positive-class probability == sigmoid of logit difference:
    #   z = (w2[:,1]-w2[:,0])^T @ h_T + (b2[1]-b2[0])                  (1, TN)
    z = jnp.dot(wdr_ref[...], h_t, preferred_element_type=jnp.float32) + bd_ref[0, 0]

    # Exact sigmoid (EUP exp + exact divide) -> lane-dense store.
    out_ref[0] = 1.0 / (1.0 + jnp.exp(-z))


def basemodel_forward(x, w1, b1, w2, b2, *, tn=None):
    """BaseModel.forward equivalent (sklearn binary predict_proba path).

    x: (N, D) float32 -> (N, 1) float32 positive-class probability.
    """
    x = jnp.asarray(x, jnp.float32)
    w1 = jnp.asarray(w1, jnp.float32)
    w2 = jnp.asarray(w2, jnp.float32)
    b1 = jnp.asarray(b1, jnp.float32).reshape(-1)   # accepts (H,) or (1,H)
    b2 = jnp.asarray(b2, jnp.float32).reshape(-1)   # accepts (C,) or (1,C)

    n, d = x.shape
    hdim = w1.shape[1]
    assert w2.shape == (hdim, 2) and b2.shape == (2,), "binary predict_proba path"
    assert b1.shape == (hdim,)

    # Tiny one-time weight reshapes (negligible next to streaming x).
    w1t = w1.T                                        # (H, D)
    b1t = b1.reshape(hdim, 1)                         # (H, 1)
    wdr = (w2[:, 1] - w2[:, 0]).reshape(1, hdim)      # (1, H) logit-difference row
    bdf = (b2[1] - b2[0]).reshape(1, 1)               # (1, 1) SMEM scalar

    # Adaptive batch tile: one step for small N; 8192-row tiles for large N
    # (x tile lane-pads to ~tn*512 B per buffer -> ~8 MiB double-buffered,
    # comfortably inside scoped VMEM on v5e/v6e/v7x).
    if tn is None:
        tn = _round_up(n, 8) if n <= 8192 else 8192
    assert tn % 8 == 0
    num_tiles = pl.cdiv(n, tn)

    out = pl.pallas_call(
        _basemodel_kernel,
        out_shape=jax.ShapeDtypeStruct((num_tiles, 1, tn), jnp.float32),
        grid_spec=pltpu.PrefetchScalarGridSpec(
            num_scalar_prefetch=0,
            grid=(num_tiles,),
            in_specs=[
                pl.BlockSpec((tn, d), lambda i: (i, 0)),        # x: streamed per tile
                pl.BlockSpec((hdim, d), lambda i: (0, 0)),      # W1^T: VMEM-resident
                pl.BlockSpec((hdim, 1), lambda i: (0, 0)),      # b1:   VMEM-resident
                pl.BlockSpec((1, hdim), lambda i: (0, 0)),      # w_diff: VMEM-resident
                pl.BlockSpec(memory_space=pltpu.MemorySpace.SMEM),  # b_diff scalar
            ],
            # Lane-dense output slab: last dim = tn (multiple of 8, usually 128).
            out_specs=pl.BlockSpec((1, 1, tn), lambda i: (i, 0, 0)),
        ),
        compiler_params=pltpu.CompilerParams(
            dimension_semantics=("parallel",),
            vmem_limit_bytes=32 * 1024 * 1024,  # explicit: v5e default is only 16 MiB
        ),
    )(x, w1t, b1t, wdr, bdf)

    # Flatten the slab and drop tail-block rows (partial last block reads past
    # the end of x; those rows are independent garbage and discarded here).
    return out.reshape(-1)[:n].reshape(n, 1)


if __name__ == "__main__":
    # Small tabular-classifier shapes: batch=300 (not a multiple of 8/128,
    # exercises the partial tail handling), features=16, hidden=32, classes=2.
    N, D, H, C = 300, 16, 32, 2

    key = jax.random.PRNGKey(0)
    kx, k1, k2, k3, k4 = jax.random.split(key, 5)

    x = jax.random.normal(kx, (N, D), dtype=jnp.float32)
    w1 = jax.random.normal(k1, (D, H), dtype=jnp.float32) * 0.1
    b1 = jax.random.normal(k2, (1, H), dtype=jnp.float32) * 0.01
    w2 = jax.random.normal(k3, (H, C), dtype=jnp.float32) * 0.1
    b2 = jax.random.normal(k4, (1, C), dtype=jnp.float32) * 0.01

    preds = basemodel_forward(x, w1, b1, w2, b2)
    jax.block_until_ready(preds)

    # Reference 1: original softmax + positive-class slice (the module's math).
    h_ref = jnp.maximum(x @ w1 + b1, 0.0)
    p_softmax = jax.nn.softmax(h_ref @ w2 + b2, axis=-1)[:, 1:2]

    # Reference 2: sigmoid-of-logit-difference (confirms the rewrite is exact).
    z_ref = h_ref @ (w2[:, 1:2] - w2[:, 0:1]) + (b2[:, 1:2] - b2[:, 0:1])
    p_sigmoid = jax.nn.sigmoid(z_ref)

    assert preds.shape == (N, 1) and preds.dtype == jnp.float32
    assert jnp.allclose(p_sigmoid, p_softmax, atol=1e-6), "sigmoid rewrite mismatch"
    # Kernel is now exact (no approximate reciprocal): tight tolerance.
    assert jnp.allclose(preds, p_softmax, atol=1e-5), "kernel mismatch vs reference"

    print("KERNEL_OK")
</pallas_src>

<mosaic_0001>
module attributes {stable_mosaic.version = 11 : i64} {
  func.func @_basemodel_kernel(%arg0: i32, %arg1: memref<304x16xf32, #tpu.memory_space<vmem>>, %arg2: memref<32x16xf32, #tpu.memory_space<vmem>>, %arg3: memref<32x1xf32, #tpu.memory_space<vmem>>, %arg4: memref<1x32xf32, #tpu.memory_space<vmem>>, %arg5: memref<1x1xf32, #tpu.memory_space<smem>>, %arg6: memref<1x1x304xf32, #tpu.memory_space<vmem>>) attributes {dimension_semantics = [#tpu.dimension_semantics<parallel>], iteration_bounds = array<i64: 1>, scalar_prefetch = 0 : i64, scratch_operands = 0 : i64, tpu.core_type = #tpu.core_type<tc>, window_params = [{transform_indices = @transform_0, window_bounds = array<i64: 304, 16>}, {pipeline_mode = #tpu.pipeline_mode<synchronous>, transform_indices = @transform_1, window_bounds = array<i64: 32, 16>}, {pipeline_mode = #tpu.pipeline_mode<synchronous>, transform_indices = @transform_2, window_bounds = array<i64: 32, 1>}, {pipeline_mode = #tpu.pipeline_mode<synchronous>, transform_indices = @transform_3, window_bounds = array<i64: 1, 32>}, {transform_indices = @transform_4, window_bounds = array<i64: 1, 1>}, {transform_indices = @transform_5, window_bounds = array<i64: 1, 1, 304>}]} {
    %c0 = arith.constant 0 : index
    %c0_0 = arith.constant 0 : index
    %0 = vector.load %arg1[%c0, %c0_0] : memref<304x16xf32, #tpu.memory_space<vmem>>, vector<304x16xf32>
    %1 = tpu.transpose %0, [1, 0] : vector<304x16xf32> -> vector<16x304xf32>
    %c0_1 = arith.constant 0 : index
    %c0_2 = arith.constant 0 : index
    %2 = vector.load %arg2[%c0_1, %c0_2] : memref<32x16xf32, #tpu.memory_space<vmem>>, vector<32x16xf32>
    %cst = arith.constant dense<0.000000e+00> : vector<32x304xf32>
    %3 = tpu.matmul %2, %1, %cst {dimension_numbers = #tpu.dot_dimension_numbers<[1], [0], [0], [1], [0, 0, 1, 1], [], []>} : vector<32x16xf32>, vector<16x304xf32>, vector<32x304xf32> -> vector<32x304xf32>
    %c0_3 = arith.constant 0 : index
    %c0_4 = arith.constant 0 : index
    %4 = vector.load %arg3[%c0_3, %c0_4] : memref<32x1xf32, #tpu.memory_space<vmem>>, vector<32x1xf32>
    %5 = vector.broadcast %4 : vector<32x1xf32> to vector<32x304xf32>
    %6 = arith.addf %3, %5 : vector<32x304xf32>
    %cst_5 = arith.constant 0.000000e+00 : f32
    %7 = vector.broadcast %cst_5 : f32 to vector<32x304xf32>
    %8 = arith.maximumf %6, %7 : vector<32x304xf32>
    %c0_6 = arith.constant 0 : index
    %c0_7 = arith.constant 0 : index
    %9 = vector.load %arg4[%c0_6, %c0_7] : memref<1x32xf32, #tpu.memory_space<vmem>>, vector<1x32xf32>
    %cst_8 = arith.constant dense<0.000000e+00> : vector<1x304xf32>
    %10 = tpu.matmul %9, %8, %cst_8 {dimension_numbers = #tpu.dot_dimension_numbers<[1], [0], [0], [1], [0, 0, 1, 1], [], []>} : vector<1x32xf32>, vector<32x304xf32>, vector<1x304xf32> -> vector<1x304xf32>
    %c0_9 = arith.constant 0 : index
    %c0_10 = arith.constant 0 : index
    %11 = memref.load %arg5[%c0_9, %c0_10] : memref<1x1xf32, #tpu.memory_space<smem>>
    %12 = vector.broadcast %11 : f32 to vector<1x304xf32>
    %13 = arith.addf %10, %12 : vector<1x304xf32>
    %cst_11 = arith.constant 0.000000e+00 : f32
    %14 = vector.broadcast %cst_11 : f32 to vector<1x304xf32>
    %15 = arith.subf %14, %13 : vector<1x304xf32>
    %16 = math.exp %15 : vector<1x304xf32>
    %cst_12 = arith.constant 1.000000e+00 : f32
    %17 = vector.broadcast %cst_12 : f32 to vector<1x304xf32>
    %18 = arith.addf %17, %16 : vector<1x304xf32>
    %cst_13 = arith.constant 1.000000e+00 : f32
    %19 = vector.broadcast %cst_13 : f32 to vector<1x304xf32>
    %20 = arith.divf %19, %18 : vector<1x304xf32>
    %c0_14 = arith.constant 0 : index
    %c0_15 = arith.constant 0 : index
    %c0_16 = arith.constant 0 : index
    %21 = vector.load %arg6[%c0_14, %c0_15, %c0_16] : memref<1x1x304xf32, #tpu.memory_space<vmem>>, vector<1x1x304xf32>
    %22 = vector.shape_cast %21 : vector<1x1x304xf32> to vector<1x304xf32>
    %23 = vector.shape_cast %20 : vector<1x304xf32> to vector<1x1x304xf32>
    tpu.vector_store %arg6[%c0_14, %c0_15, %c0_16], %23 {strides = array<i32>} : memref<1x1x304xf32, #tpu.memory_space<vmem>>, vector<1x1x304xf32>,
    return
  }
  func.func @transform_0(%arg0: i32) -> (i32, i32) {
    %c0_i32 = arith.constant 0 : i32
    %c0_i32_0 = arith.constant 0 : i32
    return %arg0, %c0_i32 : i32, i32
  }
  func.func @transform_1(%arg0: i32) -> (i32, i32) {
    %c0_i32 = arith.constant 0 : i32
    %c0_i32_0 = arith.constant 0 : i32
    %c0_i32_1 = arith.constant 0 : i32
    return %c0_i32, %c0_i32_0 : i32, i32
  }
  func.func @transform_2(%arg0: i32) -> (i32, i32) {
    %c0_i32 = arith.constant 0 : i32
    %c0_i32_0 = arith.constant 0 : i32
    %c0_i32_1 = arith.constant 0 : i32
    return %c0_i32, %c0_i32_0 : i32, i32
  }
  func.func @transform_3(%arg0: i32) -> (i32, i32) {
    %c0_i32 = arith.constant 0 : i32
    %c0_i32_0 = arith.constant 0 : i32
    %c0_i32_1 = arith.constant 0 : i32
    return %c0_i32, %c0_i32_0 : i32, i32
  }
  func.func @transform_4(%arg0: i32) -> (i32, i32) {
    %c0_i32 = arith.constant 0 : i32
    %c0_i32_0 = arith.constant 0 : i32
    %c0_i32_1 = arith.constant 0 : i32
    return %c0_i32, %c0_i32_0 : i32, i32
  }
  func.func @transform_5(%arg0: i32) -> (i32, i32, i32) {
    %c0_i32 = arith.constant 0 : i32
    %c0_i32_0 = arith.constant 0 : i32
    %c0_i32_1 = arith.constant 0 : i32
    return %arg0, %c0_i32, %c0_i32_0 : i32, i32, i32
  }
}

</mosaic_0001>

<bundles_post_ra>
// kernel: tpu_custom_call.1
= control target key start
LH: loop header
LB: loop body
LE: loop exit
PB: predicated region body
PF: predicated region fallthrough
CT: control target
= control target key end

     0   :  { %vm88_vm0 = vcmask 130048   ;;  %v786_v3 = vmov 0   ;;  %s1031_s0 = inlined_call_operand.vmem [shape: f32[300,16], index: 0, kind: input, shape index: {}]   ;;  %s1032_s1 = inlined_call_operand.vmem [shape: f32[32,16], index: 1, kind: input, shape index: {}]   ;;  %s1033_s2 = inlined_call_operand.vmem [shape: f32[32,1], index: 2, kind: input, shape index: {}]   ;;  %s1034_s3 = inlined_call_operand.vmem [shape: f32[1,32], index: 3, kind: input, shape index: {}]   ;;  %s1035_s4 = inlined_call_operand.<no memory space> [shape: f32[1,1], index: 4, kind: input, shape index: {}]   ;;  %s1036_s5 = inlined_call_operand.hbm [shape: f32[1,1,304], index: 5, kind: output, shape index: {}]  }
   0x1   :  { %v53_v0 = vld [vmem:[%s1031_s0 + $0xf8] sm:$0xff]  ;;  %v52_v2 = vld [vmem:[%s1031_s0 + $0xf0] sm:$0xff]  ;;  %751 = vset.pattern.permute.xlu1 %v786_v3  ;;  %750 = vset.pattern.permute.xlu0 %v786_v3  ;;  %v51_v5 = vld [vmem:[%s1031_s0 + $0xe8] sm:$0xff] }
   0x2   :  { %v37_v1 = vld [vmem:[%s1031_s0 + $0x78] sm:$0xff]  ;;  %661 = vmatprep.subr.msk.mxu0 %vm88_vm0, %v53_v0  ;;  %v36_v4 = vld [vmem:[%s1031_s0 + $0x70] sm:$0xff]  ;;  %v35_v6 = vld [vmem:[%s1031_s0 + $0x68] sm:$0xff] }
   0x3   :  { %662 = vmatpush3.xpose.msk.msra.mxu0 %vm88_vm0, %v37_v1  ;;  %v50_v7 = vld [vmem:[%s1031_s0 + $0xe0] sm:$0xff]  ;;  %v59_v8 = vld [vmem:[%s1031_s0 + $0x128] sm:$0xff]  ;;  %v49_v11 = vld [vmem:[%s1031_s0 + $0xd8] sm:$0xff] }
   0x4   :  { %663 = vmatprep.subr.msk.mxu0 %vm88_vm0, %v52_v2  ;;  %716 = vmatprep.subr.msk.mxu1 %vm88_vm0, %v59_v8  ;;  %v58_v9 = vld [vmem:[%s1031_s0 + $0x120] sm:$0xff]  ;;  %v57_v12 = vld [vmem:[%s1031_s0 + $0x118] sm:$0xff]  ;;  %v65_v14 = vld [vmem:[%s1033_s2 + $0x8] sm:$0xff] }
   0x5   :  { %717 = vmatpush3.xpose.msk.msra.mxu1 %vm88_vm0, %v59_v8  ;;  %v34_v10 = vld [vmem:[%s1031_s0 + $0x60] sm:$0xff]  ;;  %v67_v15 = vld [vmem:[%s1033_s2 + $0x18] sm:$0xff] }
   0x6   :  { %718 = vmatprep.subr.msk.mxu1 %vm88_vm0, %v58_v9  ;;  %v870_v13 = vld [vmem:[%s1032_s1] sm:$0xff]  ;;  %v33_v16 = vld [vmem:[%s1031_s0 + $0x58] sm:$0xff] }
   0x7   :  { %664 = vmatpush3.xpose.msk.msra.mxu0 %vm88_vm0, %v36_v4  ;;  %693 = vmatprep.mubr.msk.f32.mxu0 %vm88_vm0, %v870_v13 }
   0x8   :  { %665 = vmatprep.subr.msk.mxu0 %vm88_vm0, %v51_v5  ;;  %728 = vmatprep.mubr.msk.f32.mxu1 %vm88_vm0, %v870_v13 }
   0x9   :  { %719 = vmatpush3.xpose.msk.msra.mxu1 %vm88_vm0, %v58_v9 }
   0xa   :  { %720 = vmatprep.subr.msk.mxu1 %vm88_vm0, %v57_v12 }
   0xb   :  { %666 = vmatpush3.xpose.msk.msra.mxu0 %vm88_vm0, %v35_v6 }
   0xc   :  { %667 = vmatprep.subr.msk.mxu0 %vm88_vm0, %v50_v7 }
   0xf   :  { %668 = vmatpush3.xpose.msk.msra.mxu0 %vm88_vm0, %v34_v10 }
  0x10   :  { %669 = vmatprep.subr.msk.mxu0 %vm88_vm0, %v49_v11 }
  0x11   :  { %11 = vsyncpa [#allocation4], 0  ;;  %v48_v17 = vld [vmem:[%s1031_s0 + $0xd0] sm:$0xff]  ;;  %75 = vperm.xlu1 %751, %v65_v14   ;;  %85 = vperm.xlu0 %750, %v67_v15   ;;  %v64_v19 = vld [vmem:[%s1033_s2] sm:$0xff]  ;;  %v787_v47 = vmov 0.0   ;;  %vm404_vm1 = vcmask 261120  }
  0x12   :  { %v56_v18 = vld [vmem:[%s1031_s0 + $0x110] sm:$0xff]  ;;  %721 = vmatpush3.xpose.msk.msra.mxu1 %vm88_vm0, %v57_v12  ;;  %v47_v22 = vld [vmem:[%s1031_s0 + $0xc8] sm:$0xff]  ;;  %v46_v25 = vld [vmem:[%s1031_s0 + $0xc0] sm:$0xff]  ;;  %vm788_vm2 = vmmov 0  }
  0x13   :  { %v66_v20 = vld [vmem:[%s1033_s2 + $0x10] sm:$0xff]  ;;  %670 = vmatpush3.xpose.msk.msra.mxu0 %vm88_vm0, %v33_v16  ;;  %722 = vmatprep.subr.msk.mxu1 %vm88_vm0, %v56_v18  ;;  %v55_v23 = vld [vmem:[%s1031_s0 + $0x108] sm:$0xff]  ;;  %v54_v26 = vld [vmem:[%s1031_s0 + $0x100] sm:$0xff] }
  0x14   :  { %671 = vmatprep.subr.msk.mxu0 %vm88_vm0, %v48_v17  ;;  %v32_v21 = vld [vmem:[%s1031_s0 + $0x50] sm:$0xff]  ;;  %v31_v24 = vld [vmem:[%s1031_s0 + $0x48] sm:$0xff]  ;;  %v30_v27 = vld [vmem:[%s1031_s0 + $0x40] sm:$0xff] }
  0x15   :  { %70 = vperm.xlu1 %751, %v64_v19   ;;  %80 = vperm.xlu0 %750, %v66_v20   ;;  %v45_v28 = vld [vmem:[%s1031_s0 + $0xb8] sm:$0xff]  ;;  %v44_v30 = vld [vmem:[%s1031_s0 + $0xb0] sm:$0xff]  ;;  %v61_v31 = vld [vmem:[%s1032_s1 + $0x8] sm:$0xff] }
  0x16   :  { %723 = vmatpush3.xpose.msk.msra.mxu1 %vm88_vm0, %v56_v18  ;;  %v29_v29 = vld [vmem:[%s1031_s0 + $0x38] sm:$0xff]  ;;  %v62_v32 = vld [vmem:[%s1032_s1 + $0x10] sm:$0xff]  ;;  %v43_v35 = vld [vmem:[%s1031_s0 + $0xa8] sm:$0xff] }
  0x17   :  { %672 = vmatpush3.xpose.msk.msra.mxu0 %vm88_vm0, %v32_v21  ;;  %724 = vmatprep.subr.msk.mxu1 %vm88_vm0, %v55_v23  ;;  %v63_v33 = vld [vmem:[%s1032_s1 + $0x18] sm:$0xff]  ;;  %v28_v34 = vld [vmem:[%s1031_s0 + $0x30] sm:$0xff]  ;;  %v27_v36 = vld [vmem:[%s1031_s0 + $0x28] sm:$0xff] }
  0x18   :  { %673 = vmatprep.subr.msk.mxu0 %vm88_vm0, %v47_v22  ;;  %v42_v37 = vld [vmem:[%s1031_s0 + $0xa0] sm:$0xff]  ;;  %v41_v39 = vld [vmem:[%s1031_s0 + $0x98] sm:$0xff]  ;;  %v40_v41 = vld [vmem:[%s1031_s0 + $0x90] sm:$0xff] }
  0x19   :  { %v26_v38 = vld [vmem:[%s1031_s0 + $0x20] sm:$0xff]  ;;  %v25_v40 = vld [vmem:[%s1031_s0 + $0x18] sm:$0xff]  ;;  %v24_v42 = vld [vmem:[%s1031_s0 + $0x10] sm:$0xff] }
  0x1a   :  { %725 = vmatpush3.xpose.msk.msra.mxu1 %vm88_vm0, %v55_v23  ;;  %v39_v43 = vld [vmem:[%s1031_s0 + $0x88] sm:$0xff]  ;;  %v38_v45 = vld [vmem:[%s1031_s0 + $0x80] sm:$0xff] }
  0x1b   :  { %674 = vmatpush3.xpose.msk.msra.mxu0 %vm88_vm0, %v31_v24  ;;  %726 = vmatprep.subr.msk.mxu1 %vm88_vm0, %v54_v26  ;;  %v23_v44 = vld [vmem:[%s1031_s0 + $0x8] sm:$0xff]  ;;  %v22_v46 = vld [vmem:[%s1031_s0] sm:$0xff] }
  0x1c   :  { %675 = vmatprep.subr.msk.mxu0 %vm88_vm0, %v46_v25  ;;  %v401_v18 = vld [vmem:[%s1034_s3] sm:$0x1]  ;;  %v403_v25 = vstv %s1035_s4  ;;  %s790_s4 = smov [#allocation3]  }
  0x1d   :  { %s605_s9 = sshll.u32 %s790_s4, 4  ;;  %s606_s9 = int_to_ptr.vmem [resolvable:$true] %s605_s9 }
  0x1e   :  { %727 = vmatpush3.xpose.msk.msra.mxu1 %vm88_vm0, %v54_v26  ;;  %s764_s10 = scalar_lea.vmem %s606_s9, 48  ;;  %s768_s11 = scalar_lea.vmem %s606_s9, 64 }
  0x1f   :  { %676 = vmatpush3.xpose.msk.msra.mxu0 %vm88_vm0, %v30_v27  ;;  %p765_p0 = scmp.ne.s32.totalorder %s606_s9, %s764_s10  ;;  %p769_p1 = scmp.lt.s32.totalorder %s606_s9, %s606_s9 }
  0x20   :  { %677 = vmatprep.subr.msk.mxu0 %vm88_vm0, %v45_v28  ;;  %p770_p2 = scmp.lt.s32.totalorder %s768_s11, %s764_s10 }
  0x21   :  { %729 = vmatmul.mubr.msk.f32.vlgmr.msra.gmra.mxu1 %vm88_vm0, %v61_v31 }
  0x22   :  { %731 = vmatprep.mubr.msk.f32.mxu1 %vm88_vm0, %v62_v32  ;;  %p771_p3 = por %p770_p2, %p769_p1 }
  0x23   :  { %678 = vmatpush3.xpose.msk.msra.mxu0 %vm88_vm0, %v29_v29 }
  0x24   :  { %679 = vmatprep.subr.msk.mxu0 %vm88_vm0, %v44_v30  ;;  %p772_p4 = pnand %p771_p3, %p765_p0 }
  0x25   :  { %732 = vmatmul.mubr.msk.f32.gmra.mxu1 %vm88_vm0, %v63_v33 }
  0x26   :  { %472 = vmatprep.mubr.f32.mxu1 %v787_v47 }
  0x27   :  { %680 = vmatpush3.xpose.msk.msra.mxu0 %vm88_vm0, %v28_v34 }
  0x28   :  { %681 = vmatprep.subr.msk.mxu0 %vm88_vm0, %v43_v35 }
  0x2b   :  { %682 = vmatpush3.xpose.msk.msra.mxu0 %vm88_vm0, %v27_v36 }
  0x2c   :  { %683 = vmatprep.subr.msk.mxu0 %vm88_vm0, %v42_v37 }
  0x2f   :  { %684 = vmatpush3.xpose.msk.msra.mxu0 %vm88_vm0, %v26_v38 }
  0x30   :  { %685 = vmatprep.subr.msk.mxu0 %vm88_vm0, %v41_v39 }
  0x33   :  { %686 = vmatpush3.xpose.msk.msra.mxu0 %vm88_vm0, %v25_v40 }
  0x34   :  { %687 = vmatprep.subr.msk.mxu0 %vm88_vm0, %v40_v41 }
  0x37   :  { %688 = vmatpush3.xpose.msk.msra.mxu0 %vm88_vm0, %v24_v42 }
  0x38   :  { %689 = vmatprep.subr.msk.mxu0 %vm88_vm0, %v39_v43 }
  0x3b   :  { %690 = vmatpush3.xpose.msk.msra.mxu0 %vm88_vm0, %v23_v44 }
  0x3c   :  { %691 = vmatprep.subr.msk.mxu0 %vm88_vm0, %v38_v45  ;;  %v789_v45 = vmov 1966171168  }
  0x3f   :  { %692 = vmatpush3.xpose.msk.msra.mxu0 %vm88_vm0, %v22_v46  ;;  %v572_v46 = vunpack.c.l.s4 %v789_v45 }
  0x42   :  { %694 = vmatmul.mubr.msk.f32.vlgmr.msra.gmra.mxu0 %vm88_vm0, %v870_v13 }
  0x43   :  { %695 = vmatprep.mubr.msk.f32.mxu0 %vm88_vm0, %v61_v31 }
  0x46   :  { %696 = vmatmul.mubr.msk.f32.gmra.mxu0 %vm88_vm0, %v61_v31 }
  0x47   :  { %697 = vmatprep.mubr.msk.f32.mxu0 %vm88_vm0, %v62_v32 }
  0x4a   :  { %698 = vmatmul.mubr.msk.f32.gmra.mxu0 %vm88_vm0, %v62_v32 }
  0x4b   :  { %699 = vmatprep.mubr.msk.f32.mxu0 %vm88_vm0, %v63_v33 }
  0x4e   :  { %700 = vmatmul.mubr.msk.f32.gmra.mxu0 %vm88_vm0, %v63_v33 }
  0x8c   :  { %v86_v52 = vpop.permute.xlu0 %85  ;;  %v76_v56 = vpop.permute.xlu1 %75 }
  0x90   :  { %v81_v58 = vpop.permute.xlu0 %80  ;;  %v71_v1 = vpop.permute.xlu1 %70 }
  0xe1   :  { %v730_v54 = vpop.f32.mrf.mxu1 }
  0xe2   :  { %v376_v19 = vadd.f32 %v730_v54, %v76_v56 }
  0xe3   :  { %v370_v59 = vpop.f32.mrf.mxu1 }
  0xe4   :  { %v371_v21 = vadd.f32 %v370_v59, %v71_v1  ;;  %v394_v23 = vmax.f32 %v376_v19, 0.0 }
  0xe5   :  { %v733_v3 = vpop.f32.mrf.mxu1 }
  0xe6   :  { %v386_v14 = vadd.f32 %v733_v3, %v86_v52  ;;  %v391_v24 = vmax.f32 %v371_v21, 0.0 }
  0xe7   :  { %v380_v12 = vpop.f32.mrf.mxu1 }
  0xe8   :  { %v381_v17 = vadd.f32 %v380_v12, %v81_v58  ;;  %v400_v20 = vmax.f32 %v386_v14, 0.0 }
  0xea   :  { %v397_v22 = vmax.f32 %v381_v17, 0.0 }
 0x102   :  { %v281_v48 = vpop.f32.mrf.mxu0 }
 0x103   :  { %v282_v9 = vadd.f32 %v281_v48, %v71_v1 }
 0x104   :  { %v283_v49 = vpop.f32.mrf.mxu0 }
 0x105   :  { %v284_v7 = vadd.f32 %v283_v49, %v71_v1  ;;  %v389_v16 = vmax.f32 %v282_v9, 0.0  ;;  %v573_v49 = vunpack.c.0.s8 %v572_v46 }
 0x106   :  { %v287_v50 = vpop.f32.mrf.mxu0 }
 0x107   :  { %v288_v5 = vadd.f32 %v287_v50, %v76_v56  ;;  %v390_v15 = vmax.f32 %v284_v7, 0.0 }
 0x108   :  { %v289_v51 = vpop.f32.mrf.mxu0 }
 0x109   :  { %v290_v2 = vadd.f32 %v289_v51, %v76_v56  ;;  %v392_v13 = vmax.f32 %v288_v5, 0.0 }
 0x10a   :  { %v293_v53 = vpop.f32.mrf.mxu0 }
 0x10b   :  { %v294_v0 = vadd.f32 %v293_v53, %v81_v58  ;;  %v393_v11 = vmax.f32 %v290_v2, 0.0 }
 0x10c   :  { %v295_v55 = vpop.f32.mrf.mxu0 }
 0x10d   :  { %v296_v62 = vadd.f32 %v295_v55, %v81_v58  ;;  %v395_v10 = vmax.f32 %v294_v0, 0.0 }
 0x10e   :  { %v299_v57 = vpop.f32.mrf.mxu0 }
 0x10f   :  { %v300_v60 = vadd.f32 %v299_v57, %v86_v52  ;;  %v396_v8 = vmax.f32 %v296_v62, 0.0 }
 0x110   :  { %v301_v61 = vpop.f32.mrf.mxu0 }
 0x111   :  { %v302_v63 = vadd.f32 %v301_v61, %v86_v52  ;;  %v398_v6 = vmax.f32 %v300_v60, 0.0 }
 0x113   :  { %v399_v4 = vmax.f32 %v302_v63, 0.0 }
 0x115   :  { %432 = vmatprep.subr.mxu1 %v399_v4 }
 0x116   :  { %433 = vmatpush1.msra.mxu1 %v398_v6 }
 0x117   :  { %434 = vmatprep.subr.mxu1 %v396_v8 }
 0x118   :  { %435 = vmatpush1.msra.mxu1 %v395_v10 }
 0x119   :  { %436 = vmatprep.subr.mxu1 %v393_v11 }
 0x11a   :  { %437 = vmatpush1.msra.mxu1 %v392_v13 }
 0x11b   :  { %438 = vmatprep.subr.mxu1 %v390_v15 }
 0x11c   :  { %439 = vmatpush1.msra.mxu1 %v389_v16 }
 0x11d   :  { %659 = vmatmul.mubr.msk.f32.vlgmr.msra.gmra.mxu1 %vm404_vm1, %v401_v18  ;;  %734 = vmatprep.subr.mxu1 %v787_v47 }
 0x11e   :  { %735 = vmatpush3.msra.mxu1 %v400_v20  ;;  %742 = vmatprep.mubr.msk.f32.mxu1 %vm788_vm2, %v787_v47 }
 0x11f   :  { %736 = vmatprep.subr.mxu1 %v787_v47 }
 0x120   :  { %737 = vmatpush3.msra.mxu1 %v397_v22 }
 0x121   :  { %738 = vmatprep.subr.mxu1 %v787_v47 }
 0x122   :  { %739 = vmatpush3.msra.mxu1 %v394_v23 }
 0x123   :  { %740 = vmatprep.subr.mxu1 %v787_v47  ;;  %v574_v47 = vlaneseq }
 0x124   :  { %741 = vmatpush3.msra.mxu1 %v391_v24 }
 0x125   :  { %743 = vmatmul.mubr.msk.f32.vlgmr.msra.gmra.mxu1 %vm404_vm1, %v401_v18  ;;  %v575_v50 = vshrl.u32 %v574_v47, 7  ;;  %vm596_vm3 = vcmp.lt.s32.totalorder %v574_v47, 304 }
 0x127   :  { %v576_v53 = vsub.s32 %v573_v49, %v575_v50 }
 0x1dd   :  { %v474_v26 = vpop.f32.mrf.mxu1 }
 0x1de   :  { %v475_v27 = vadd.f32 %v474_v26, %v403_v25 }
 0x1df   :  { %v476_v28 = vpop.f32.mrf.mxu1 }
 0x1e0   :  { %v549_v29 = vsub.f32 0.0, %v475_v27  ;;  %v477_v30 = vadd.f32 %v476_v28, %v403_v25 }
 0x1e2   :  { %v552_v31 = vmul.f32 1.442695, %v549_v29  ;;  %v550_v32 = vsub.f32 0.0, %v477_v30 }
 0x1e4   :  { %752 = vpow2.f32 %v552_v31  ;;  %v554_v33 = vmul.f32 1.442695, %v550_v32 }
 0x1e5   :  { %v545_v34 = vpop.f32.mrf.mxu1 }
 0x1e6   :  { %754 = vpow2.f32 %v554_v33  ;;  %v546_v35 = vadd.f32 %v545_v34, %v403_v25 }
 0x1e7   :  { %v744_v36 = vpop.f32.mrf.mxu1 }
 0x1e8   :  { %v551_v37 = vsub.f32 0.0, %v546_v35 }
 0x1ea   :  { %v556_v38 = vmul.f32 1.442695, %v551_v37 }
 0x1ec   :  { %756 = vpow2.f32 %v556_v38 }
 0x1f1   :  { %v753_v39 = vpop.eup %752 }
 0x1f2   :  { %v558_v40 = vadd.f32 1.0, %v753_v39 }
 0x1f3   :  { %v755_v41 = vpop.eup %754 }
 0x1f4   :  { %v559_v42 = vadd.f32 1.0, %v755_v41  ;;  %758 = vrcp.f32 %v558_v40 }
 0x1f6   :  { %760 = vrcp.f32 %v559_v42 }
 0x1f9   :  { %v757_v43 = vpop.eup %756 }
 0x1fa   :  { %v560_v44 = vadd.f32 1.0, %v757_v43 }
 0x1fc   :  { %762 = vrcp.f32 %v560_v44 }
 0x201   :  { %v759_v48 = vpop.eup %758 }
 0x203   :  { %v761_v51 = vpop.eup %760 }
 0x204   :  { %v570_v52 = vcombine.low %v759_v48, %v761_v51 }
 0x206   :  { %v577_v55 = vrot.slane %v570_v52, %v576_v53 }
 0x209   :  { %v763_v54 = vpop.eup %762 }
 0x20a   :  { %v584_v56 = vrot.slane %v763_v54, %v576_v53 }
 0x20c   :  { %v585_v57 = vcombine.low %v577_v55, %v584_v56 }
 0x20e   :  { %v592_v58 = vrot.slane %v585_v57, %v576_v53 }
 0x210   :  { %598 = vst.msk [vmem:[#allocation3] sm:$0x7] %vm596_vm3, %v592_v58 }
 0x211   :  { %775 = shalt.err (!%p772_p4)
}
 0x212   :  { %608 = dma.vmem_to_hbm [thread:$0]  %s606_s9, 48, %s1036_s5, [#allocation4]  }
 0x213   :  { %784 = dma.done.wait [#allocation4], 48  }
 0x214   :  { %785 = vsyncadd [#allocation4], 4294967248 }
 0x215   :  { %612 = vsyncpa [#allocation4], 1 }

</bundles_post_ra>
